<compile_context>
chip_gen: v7x
topology: tpu7x:2x2x1
jax: 0.10.0
libtpu: 0.0.40
codegen_flags: <defaults>
</compile_context>

<pallas_src>
import numpy as np
import jax
import jax.numpy as jnp
from jax import lax
from jax.experimental import pallas as pl
from jax.experimental.pallas import tpu as pltpu

# -------------------- model hyper-parameters (synthetic, small) --------------
N, C_IN, H, W = 2, 4, 16, 16           # input  [N, C, H, W]
C_OUT, KH, KW = 8, 3, 3                # Conv2d(4 -> 8, k=3, stride=1, pad=0)
POOL = 2                               # AvgPool2d(kernel=2, stride=2)
OH, OW = H - KH + 1, W - KW + 1        # 14, 14
PH, PW = OH // POOL, OW // POOL        # 7, 7
FC_IN, FC_OUT = C_OUT * PH * PW, 10    # Linear(392 -> 10)

LANE = 128                             # lane-dense padding for matmul N dims / stores
X_COLS = W * C_IN                      # 64  input-slab lanes  (w, c_in)
X_ROWS = N * H                         # 32  input-slab rows   (n, h)
X_PAD_ROWS = 8                         # zero rows so the ki=1,2 shifted windows stay in-bounds
CONV_ROWS = X_ROWS                     # 32 conv rows (rows 14,15 / 30,31 are junk, never read)
FC_K = (PH + 1) * LANE                 # 1024 FC contraction rows (ph block * 128 lanes)

# ApproxReLU polynomial used by uni_henn: 0.375373 + 0.5*x + 0.117071*x^2
A0, A1, A2 = 0.375373, 0.5, 0.117071


# ------------------------------- fused Pallas kernel -------------------------
def he_cnn_kernel(x_ref, cw_ref, cb_ref, fw_ref, fb_ref, o_ref, conv_scr, fcin_scr):
    # x_ref    : [40, 64]        input slab, row = n*H + h, lane = w*C_IN + c (8 zero pad rows)
    # cw_ref   : [3, 64, 128]    banded conv weights per kh: [w*C_IN+c, ow*C_OUT+o] (112 valid lanes)
    # cb_ref   : [1, 128]        conv bias broadcast over ow (112 valid lanes)
    # fw_ref   : [1024, 128]     FC weights; rows = ph*128 + ow*C_OUT + c, absorb hpool + 0.25
    # fb_ref   : [1, 128]        fc bias (zero padded)
    # o_ref    : [2, 128]        lane-dense output; cols >= FC_OUT never consumed
    # conv_scr : [32, 128]       conv output slab (row = n*H + oh, lane = ow*C_OUT + c)
    # fcin_scr : [2, 1024]       per-sample flattened FC input (lane block j holds ph=j row)

    # ---- Conv2d: 3 banded MXU matmuls on row-shifted input windows (no im2col) ----
    acc = jnp.dot(x_ref[0:CONV_ROWS, :], cw_ref[0], preferred_element_type=jnp.float32)
    acc = acc + jnp.dot(x_ref[1:CONV_ROWS + 1, :], cw_ref[1], preferred_element_type=jnp.float32)
    acc = acc + jnp.dot(x_ref[2:CONV_ROWS + 2, :], cw_ref[2], preferred_element_type=jnp.float32)
    conv_scr[...] = acc + cb_ref[...]

    # ---- AvgPool2d vertical pair-sum: one whole-slab strided add --------------
    # (the horizontal pair-sum and the 1/4 scale are folded into fw_ref)
    vsum = (conv_scr[pl.ds(0, CONV_ROWS // 2, stride=2), :]
            + conv_scr[pl.ds(1, CONV_ROWS // 2, stride=2), :])            # [16, 128]

    # ---- Flatten: 16 full-lane-width [1,128] row stores (rows -> lane blocks) --
    # j == PH rows are finite junk (cross-sample / pad rows); the matching fw rows
    # are zero, and storing them keeps fcin_scr fully initialized (no NaN garbage).
    for n in range(N):
        for j in range(PH + 1):
            k = n * (PH + 1) + j
            fcin_scr[n:n + 1, j * LANE:(j + 1) * LANE] = vsum[k:k + 1, :]

    # ---- Linear (+ folded horizontal pool) + Square + ApproxReLU (Horner) ------
    y = jnp.dot(fcin_scr[...], fw_ref[...], preferred_element_type=jnp.float32) + fb_ref[...]
    z = y * y                                # Square layer
    o_ref[...] = A0 + z * (A1 + A2 * z)      # ApproxReLU(z), Horner form


# ------------------------------ one-time weight packing -----------------------
def pack_params(conv_w, conv_b, fc_w, fc_b):
    """Host-side repacking of PyTorch-layout weights into the kernel's banded /
    lane-dense layouts. Done ONCE, outside the jitted per-call path."""
    cw4 = np.asarray(conv_w, np.float32)                    # [C_OUT, C_IN, KH, KW]
    cwb = np.zeros((KH, X_COLS, LANE), np.float32)          # banded: lane_out = ow*C_OUT + o
    for ki in range(KH):
        for kj in range(KW):
            blk = cw4[:, :, ki, kj].T                       # [C_IN, C_OUT]
            for ow in range(OW):
                w = ow + kj
                cwb[ki, w * C_IN:(w + 1) * C_IN, ow * C_OUT:(ow + 1) * C_OUT] = blk

    cbp = np.zeros((1, LANE), np.float32)
    cbn = np.asarray(conv_b, np.float32)
    for ow in range(OW):
        cbp[0, ow * C_OUT:(ow + 1) * C_OUT] = cbn

    # FC weights: absorb horizontal avg-pool pairing and the 1/4 scale.
    # fcin row layout: feature at (ph=j, ow, c) sits at row j*128 + ow*C_OUT + c,
    # and maps to reference flatten index f = c*PH*PW + j*PW + (ow//2).
    fw4 = np.asarray(fc_w, np.float32).reshape(FC_OUT, C_OUT, PH, PW)
    fwp = np.zeros((FC_K, LANE), np.float32)
    for j in range(PH):
        for ow in range(OW):
            base = j * LANE + ow * C_OUT
            fwp[base:base + C_OUT, :FC_OUT] = 0.25 * fw4[:, :, j, ow // 2].T

    fbp = np.zeros((1, LANE), np.float32)
    fbp[0, :FC_OUT] = np.asarray(fc_b, np.float32)

    return (jnp.asarray(cwb), jnp.asarray(cbp), jnp.asarray(fwp), jnp.asarray(fbp))


# ------------------------------- JAX wrapper ----------------------------------
def _full_vmem_spec(shape):
    return pl.BlockSpec(shape, lambda *_: (0,) * len(shape))


@jax.jit
def he_cnn_forward(x, cwb, cbp, fwp, fbp):
    # Input relayout: NCHW -> NHWC -> [N*H, W*C_IN] slab, plus 8 zero rows so the
    # kh=1,2 shifted conv windows stay in bounds.
    # TODO(synk): accept NHWC input upstream to drop this transpose entirely.
    x_slab = jnp.transpose(x, (0, 2, 3, 1)).reshape(X_ROWS, X_COLS)
    x_slab = jnp.pad(x_slab, ((0, X_PAD_ROWS), (0, 0)))                    # [40, 64]

    out_pad = pl.pallas_call(
        he_cnn_kernel,
        out_shape=jax.ShapeDtypeStruct((N, LANE), jnp.float32),
        in_specs=[
            _full_vmem_spec(x_slab.shape),
            _full_vmem_spec(cwb.shape),
            _full_vmem_spec(cbp.shape),
            _full_vmem_spec(fwp.shape),
            _full_vmem_spec(fbp.shape),
        ],
        out_specs=_full_vmem_spec((N, LANE)),
        scratch_shapes=[
            pltpu.VMEM((CONV_ROWS, LANE), jnp.float32),   # conv output slab (16 KiB)
            pltpu.VMEM((N, FC_K), jnp.float32),           # flattened FC input (8 KiB used)
        ],
    )(x_slab, cwb, cbp, fwp, fbp)

    # Drop the padded lanes; cols >= FC_OUT are never consumed.
    return out_pad[:, :FC_OUT]


def reference_forward(x, conv_w, conv_b, fc_w, fc_b):
    # pure-JAX reference for sanity checking
    y = lax.conv_general_dilated(
        x, conv_w, window_strides=(1, 1), padding="VALID",
        dimension_numbers=("NCHW", "OIHW", "NCHW"),
    ) + conv_b.reshape(1, C_OUT, 1, 1)
    y = y.reshape(N, C_OUT, PH, POOL, PW, POOL).mean(axis=(3, 5))
    y = y.reshape(N, FC_IN)
    y = y @ fc_w.T + fc_b
    z = y * y
    return A0 + A1 * z + A2 * z * z


# --------------------------------- main ---------------------------------------
if __name__ == "__main__":
    key = jax.random.PRNGKey(0)
    kx, kcw, kcb, kfw, kfb = jax.random.split(key, 5)

    x = jax.random.normal(kx, (N, C_IN, H, W), dtype=jnp.float32)
    conv_w = jax.random.normal(kcw, (C_OUT, C_IN, KH, KW), dtype=jnp.float32) * 0.1
    conv_b = jax.random.normal(kcb, (C_OUT,), dtype=jnp.float32) * 0.1
    fc_w = jax.random.normal(kfw, (FC_OUT, FC_IN), dtype=jnp.float32) * 0.05
    fc_b = jax.random.normal(kfb, (FC_OUT,), dtype=jnp.float32) * 0.05

    packed = pack_params(conv_w, conv_b, fc_w, fc_b)   # one-time host-side packing

    out = jax.block_until_ready(he_cnn_forward(x, *packed))
    ref = jax.block_until_ready(reference_forward(x, conv_w, conv_b, fc_w, fc_b))

    assert out.shape == (N, FC_OUT)
    # Tolerance accommodates MXU matmul precision differences between the banded
    # decomposition in the kernel and XLA's conv/matmul reference.
    assert jnp.allclose(out, ref, rtol=1e-2, atol=1e-2), "mismatch vs JAX reference"

    # TODO(synk): CKKS encrypt/decrypt, depth accounting (re_depth/calculate_depth)
    # and ciphertext packing (Output, data_size) have no Pallas equivalent; only
    # the plaintext layer arithmetic is implemented.
    print("KERNEL_OK")
</pallas_src>

<mosaic_0001>
module attributes {stable_mosaic.version = 11 : i64} {
  func.func @he_cnn_kernel(%arg0: memref<40x64xf32, #tpu.memory_space<vmem>>, %arg1: memref<3x64x128xf32, #tpu.memory_space<vmem>>, %arg2: memref<1x128xf32, #tpu.memory_space<vmem>>, %arg3: memref<1024x128xf32, #tpu.memory_space<vmem>>, %arg4: memref<1x128xf32, #tpu.memory_space<vmem>>, %arg5: memref<2x128xf32, #tpu.memory_space<vmem>>, %arg6: memref<32x128xf32, #tpu.memory_space<vmem>>, %arg7: memref<2x1024xf32, #tpu.memory_space<vmem>>) attributes {dimension_semantics = [], scalar_prefetch = 0 : i64, scratch_operands = 2 : i64, tpu.core_type = #tpu.core_type<tc>} {
    %c0 = arith.constant 0 : index
    %c0_0 = arith.constant 0 : index
    %0 = vector.load %arg0[%c0, %c0_0] : memref<40x64xf32, #tpu.memory_space<vmem>>, vector<32x64xf32>
    %c0_1 = arith.constant 0 : index
    %c0_2 = arith.constant 0 : index
    %c0_3 = arith.constant 0 : index
    %1 = vector.load %arg1[%c0_1, %c0_2, %c0_3] : memref<3x64x128xf32, #tpu.memory_space<vmem>>, vector<1x64x128xf32>
    %2 = vector.shape_cast %1 : vector<1x64x128xf32> to vector<64x128xf32>
    %cst = arith.constant dense<0.000000e+00> : vector<32x128xf32>
    %3 = tpu.matmul %0, %2, %cst {dimension_numbers = #tpu.dot_dimension_numbers<[1], [0], [0], [1], [0, 0, 1, 1], [], []>} : vector<32x64xf32>, vector<64x128xf32>, vector<32x128xf32> -> vector<32x128xf32>
    %c1 = arith.constant 1 : index
    %c0_4 = arith.constant 0 : index
    %4 = vector.load %arg0[%c1, %c0_4] : memref<40x64xf32, #tpu.memory_space<vmem>>, vector<32x64xf32>
    %c1_5 = arith.constant 1 : index
    %c0_6 = arith.constant 0 : index
    %c0_7 = arith.constant 0 : index
    %5 = vector.load %arg1[%c1_5, %c0_6, %c0_7] : memref<3x64x128xf32, #tpu.memory_space<vmem>>, vector<1x64x128xf32>
    %6 = vector.shape_cast %5 : vector<1x64x128xf32> to vector<64x128xf32>
    %cst_8 = arith.constant dense<0.000000e+00> : vector<32x128xf32>
    %7 = tpu.matmul %4, %6, %cst_8 {dimension_numbers = #tpu.dot_dimension_numbers<[1], [0], [0], [1], [0, 0, 1, 1], [], []>} : vector<32x64xf32>, vector<64x128xf32>, vector<32x128xf32> -> vector<32x128xf32>
    %8 = arith.addf %3, %7 : vector<32x128xf32>
    %c2 = arith.constant 2 : index
    %c0_9 = arith.constant 0 : index
    %9 = vector.load %arg0[%c2, %c0_9] : memref<40x64xf32, #tpu.memory_space<vmem>>, vector<32x64xf32>
    %c2_10 = arith.constant 2 : index
    %c0_11 = arith.constant 0 : index
    %c0_12 = arith.constant 0 : index
    %10 = vector.load %arg1[%c2_10, %c0_11, %c0_12] : memref<3x64x128xf32, #tpu.memory_space<vmem>>, vector<1x64x128xf32>
    %11 = vector.shape_cast %10 : vector<1x64x128xf32> to vector<64x128xf32>
    %cst_13 = arith.constant dense<0.000000e+00> : vector<32x128xf32>
    %12 = tpu.matmul %9, %11, %cst_13 {dimension_numbers = #tpu.dot_dimension_numbers<[1], [0], [0], [1], [0, 0, 1, 1], [], []>} : vector<32x64xf32>, vector<64x128xf32>, vector<32x128xf32> -> vector<32x128xf32>
    %13 = arith.addf %8, %12 : vector<32x128xf32>
    %c0_14 = arith.constant 0 : index
    %c0_15 = arith.constant 0 : index
    %14 = vector.load %arg2[%c0_14, %c0_15] : memref<1x128xf32, #tpu.memory_space<vmem>>, vector<1x128xf32>
    %15 = vector.broadcast %14 : vector<1x128xf32> to vector<32x128xf32>
    %16 = arith.addf %13, %15 : vector<32x128xf32>
    %c0_16 = arith.constant 0 : index
    %c0_17 = arith.constant 0 : index
    %17 = vector.load %arg6[%c0_16, %c0_17] : memref<32x128xf32, #tpu.memory_space<vmem>>, vector<32x128xf32>
    tpu.vector_store %arg6[%c0_16, %c0_17], %16 {strides = array<i32>} : memref<32x128xf32, #tpu.memory_space<vmem>>, vector<32x128xf32>,
    %c0_18 = arith.constant 0 : index
    %c0_19 = arith.constant 0 : index
    %18 = tpu.strided_load %arg6[%c0_18, %c0_19] {strides = array<i32: 2, 1>} : memref<32x128xf32, #tpu.memory_space<vmem>>, vector<16x128xf32>
    %c1_20 = arith.constant 1 : index
    %c0_21 = arith.constant 0 : index
    %19 = tpu.strided_load %arg6[%c1_20, %c0_21] {strides = array<i32: 2, 1>} : memref<32x128xf32, #tpu.memory_space<vmem>>, vector<16x128xf32>
    %20 = arith.addf %18, %19 : vector<16x128xf32>
    %21 = vector.extract_strided_slice %20 {offsets = [0, 0], sizes = [1, 128], strides = [1, 1]} : vector<16x128xf32> to vector<1x128xf32>
    %c0_22 = arith.constant 0 : index
    %c0_23 = arith.constant 0 : index
    %22 = vector.load %arg7[%c0_22, %c0_23] : memref<2x1024xf32, #tpu.memory_space<vmem>>, vector<1x128xf32>
    tpu.vector_store %arg7[%c0_22, %c0_23], %21 {strides = array<i32>} : memref<2x1024xf32, #tpu.memory_space<vmem>>, vector<1x128xf32>,
    %23 = vector.extract_strided_slice %20 {offsets = [1, 0], sizes = [1, 128], strides = [1, 1]} : vector<16x128xf32> to vector<1x128xf32>
    %c0_24 = arith.constant 0 : index
    %c128 = arith.constant 128 : index
    %24 = vector.load %arg7[%c0_24, %c128] : memref<2x1024xf32, #tpu.memory_space<vmem>>, vector<1x128xf32>
    tpu.vector_store %arg7[%c0_24, %c128], %23 {strides = array<i32>} : memref<2x1024xf32, #tpu.memory_space<vmem>>, vector<1x128xf32>,
    %25 = vector.extract_strided_slice %20 {offsets = [2, 0], sizes = [1, 128], strides = [1, 1]} : vector<16x128xf32> to vector<1x128xf32>
    %c0_25 = arith.constant 0 : index
    %c256 = arith.constant 256 : index
    %26 = vector.load %arg7[%c0_25, %c256] : memref<2x1024xf32, #tpu.memory_space<vmem>>, vector<1x128xf32>
    tpu.vector_store %arg7[%c0_25, %c256], %25 {strides = array<i32>} : memref<2x1024xf32, #tpu.memory_space<vmem>>, vector<1x128xf32>,
    %27 = vector.extract_strided_slice %20 {offsets = [3, 0], sizes = [1, 128], strides = [1, 1]} : vector<16x128xf32> to vector<1x128xf32>
    %c0_26 = arith.constant 0 : index
    %c384 = arith.constant 384 : index
    %28 = vector.load %arg7[%c0_26, %c384] : memref<2x1024xf32, #tpu.memory_space<vmem>>, vector<1x128xf32>
    tpu.vector_store %arg7[%c0_26, %c384], %27 {strides = array<i32>} : memref<2x1024xf32, #tpu.memory_space<vmem>>, vector<1x128xf32>,
    %29 = vector.extract_strided_slice %20 {offsets = [4, 0], sizes = [1, 128], strides = [1, 1]} : vector<16x128xf32> to vector<1x128xf32>
    %c0_27 = arith.constant 0 : index
    %c512 = arith.constant 512 : index
    %30 = vector.load %arg7[%c0_27, %c512] : memref<2x1024xf32, #tpu.memory_space<vmem>>, vector<1x128xf32>
    tpu.vector_store %arg7[%c0_27, %c512], %29 {strides = array<i32>} : memref<2x1024xf32, #tpu.memory_space<vmem>>, vector<1x128xf32>,
    %31 = vector.extract_strided_slice %20 {offsets = [5, 0], sizes = [1, 128], strides = [1, 1]} : vector<16x128xf32> to vector<1x128xf32>
    %c0_28 = arith.constant 0 : index
    %c640 = arith.constant 640 : index
    %32 = vector.load %arg7[%c0_28, %c640] : memref<2x1024xf32, #tpu.memory_space<vmem>>, vector<1x128xf32>
    tpu.vector_store %arg7[%c0_28, %c640], %31 {strides = array<i32>} : memref<2x1024xf32, #tpu.memory_space<vmem>>, vector<1x128xf32>,
    %33 = vector.extract_strided_slice %20 {offsets = [6, 0], sizes = [1, 128], strides = [1, 1]} : vector<16x128xf32> to vector<1x128xf32>
    %c0_29 = arith.constant 0 : index
    %c768 = arith.constant 768 : index
    %34 = vector.load %arg7[%c0_29, %c768] : memref<2x1024xf32, #tpu.memory_space<vmem>>, vector<1x128xf32>
    tpu.vector_store %arg7[%c0_29, %c768], %33 {strides = array<i32>} : memref<2x1024xf32, #tpu.memory_space<vmem>>, vector<1x128xf32>,
    %35 = vector.extract_strided_slice %20 {offsets = [7, 0], sizes = [1, 128], strides = [1, 1]} : vector<16x128xf32> to vector<1x128xf32>
    %c0_30 = arith.constant 0 : index
    %c896 = arith.constant 896 : index
    %36 = vector.load %arg7[%c0_30, %c896] : memref<2x1024xf32, #tpu.memory_space<vmem>>, vector<1x128xf32>
    tpu.vector_store %arg7[%c0_30, %c896], %35 {strides = array<i32>} : memref<2x1024xf32, #tpu.memory_space<vmem>>, vector<1x128xf32>,
    %37 = vector.extract_strided_slice %20 {offsets = [8, 0], sizes = [1, 128], strides = [1, 1]} : vector<16x128xf32> to vector<1x128xf32>
    %c1_31 = arith.constant 1 : index
    %c0_32 = arith.constant 0 : index
    %38 = vector.load %arg7[%c1_31, %c0_32] : memref<2x1024xf32, #tpu.memory_space<vmem>>, vector<1x128xf32>
    tpu.vector_store %arg7[%c1_31, %c0_32], %37 {strides = array<i32>} : memref<2x1024xf32, #tpu.memory_space<vmem>>, vector<1x128xf32>,
    %39 = vector.extract_strided_slice %20 {offsets = [9, 0], sizes = [1, 128], strides = [1, 1]} : vector<16x128xf32> to vector<1x128xf32>
    %c1_33 = arith.constant 1 : index
    %c128_34 = arith.constant 128 : index
    %40 = vector.load %arg7[%c1_33, %c128_34] : memref<2x1024xf32, #tpu.memory_space<vmem>>, vector<1x128xf32>
    tpu.vector_store %arg7[%c1_33, %c128_34], %39 {strides = array<i32>} : memref<2x1024xf32, #tpu.memory_space<vmem>>, vector<1x128xf32>,
    %41 = vector.extract_strided_slice %20 {offsets = [10, 0], sizes = [1, 128], strides = [1, 1]} : vector<16x128xf32> to vector<1x128xf32>
    %c1_35 = arith.constant 1 : index
    %c256_36 = arith.constant 256 : index
    %42 = vector.load %arg7[%c1_35, %c256_36] : memref<2x1024xf32, #tpu.memory_space<vmem>>, vector<1x128xf32>
    tpu.vector_store %arg7[%c1_35, %c256_36], %41 {strides = array<i32>} : memref<2x1024xf32, #tpu.memory_space<vmem>>, vector<1x128xf32>,
    %43 = vector.extract_strided_slice %20 {offsets = [11, 0], sizes = [1, 128], strides = [1, 1]} : vector<16x128xf32> to vector<1x128xf32>
    %c1_37 = arith.constant 1 : index
    %c384_38 = arith.constant 384 : index
    %44 = vector.load %arg7[%c1_37, %c384_38] : memref<2x1024xf32, #tpu.memory_space<vmem>>, vector<1x128xf32>
    tpu.vector_store %arg7[%c1_37, %c384_38], %43 {strides = array<i32>} : memref<2x1024xf32, #tpu.memory_space<vmem>>, vector<1x128xf32>,
    %45 = vector.extract_strided_slice %20 {offsets = [12, 0], sizes = [1, 128], strides = [1, 1]} : vector<16x128xf32> to vector<1x128xf32>
    %c1_39 = arith.constant 1 : index
    %c512_40 = arith.constant 512 : index
    %46 = vector.load %arg7[%c1_39, %c512_40] : memref<2x1024xf32, #tpu.memory_space<vmem>>, vector<1x128xf32>
    tpu.vector_store %arg7[%c1_39, %c512_40], %45 {strides = array<i32>} : memref<2x1024xf32, #tpu.memory_space<vmem>>, vector<1x128xf32>,
    %47 = vector.extract_strided_slice %20 {offsets = [13, 0], sizes = [1, 128], strides = [1, 1]} : vector<16x128xf32> to vector<1x128xf32>
    %c1_41 = arith.constant 1 : index
    %c640_42 = arith.constant 640 : index
    %48 = vector.load %arg7[%c1_41, %c640_42] : memref<2x1024xf32, #tpu.memory_space<vmem>>, vector<1x128xf32>
    tpu.vector_store %arg7[%c1_41, %c640_42], %47 {strides = array<i32>} : memref<2x1024xf32, #tpu.memory_space<vmem>>, vector<1x128xf32>,
    %49 = vector.extract_strided_slice %20 {offsets = [14, 0], sizes = [1, 128], strides = [1, 1]} : vector<16x128xf32> to vector<1x128xf32>
    %c1_43 = arith.constant 1 : index
    %c768_44 = arith.constant 768 : index
    %50 = vector.load %arg7[%c1_43, %c768_44] : memref<2x1024xf32, #tpu.memory_space<vmem>>, vector<1x128xf32>
    tpu.vector_store %arg7[%c1_43, %c768_44], %49 {strides = array<i32>} : memref<2x1024xf32, #tpu.memory_space<vmem>>, vector<1x128xf32>,
    %51 = vector.extract_strided_slice %20 {offsets = [15, 0], sizes = [1, 128], strides = [1, 1]} : vector<16x128xf32> to vector<1x128xf32>
    %c1_45 = arith.constant 1 : index
    %c896_46 = arith.constant 896 : index
    %52 = vector.load %arg7[%c1_45, %c896_46] : memref<2x1024xf32, #tpu.memory_space<vmem>>, vector<1x128xf32>
    tpu.vector_store %arg7[%c1_45, %c896_46], %51 {strides = array<i32>} : memref<2x1024xf32, #tpu.memory_space<vmem>>, vector<1x128xf32>,
    %c0_47 = arith.constant 0 : index
    %c0_48 = arith.constant 0 : index
    %53 = vector.load %arg7[%c0_47, %c0_48] : memref<2x1024xf32, #tpu.memory_space<vmem>>, vector<2x1024xf32>
    %c0_49 = arith.constant 0 : index
    %c0_50 = arith.constant 0 : index
    %54 = vector.load %arg3[%c0_49, %c0_50] : memref<1024x128xf32, #tpu.memory_space<vmem>>, vector<1024x128xf32>
    %cst_51 = arith.constant dense<0.000000e+00> : vector<2x128xf32>
    %55 = tpu.matmul %53, %54, %cst_51 {dimension_numbers = #tpu.dot_dimension_numbers<[1], [0], [0], [1], [0, 0, 1, 1], [], []>} : vector<2x1024xf32>, vector<1024x128xf32>, vector<2x128xf32> -> vector<2x128xf32>
    %c0_52 = arith.constant 0 : index
    %c0_53 = arith.constant 0 : index
    %56 = vector.load %arg4[%c0_52, %c0_53] : memref<1x128xf32, #tpu.memory_space<vmem>>, vector<1x128xf32>
    %57 = vector.broadcast %56 : vector<1x128xf32> to vector<2x128xf32>
    %58 = arith.addf %55, %57 : vector<2x128xf32>
    %59 = arith.mulf %58, %58 : vector<2x128xf32>
    %cst_54 = arith.constant 1.170710e-01 : f32
    %60 = vector.broadcast %cst_54 : f32 to vector<2x128xf32>
    %61 = arith.mulf %60, %59 : vector<2x128xf32>
    %cst_55 = arith.constant 5.000000e-01 : f32
    %62 = vector.broadcast %cst_55 : f32 to vector<2x128xf32>
    %63 = arith.addf %62, %61 : vector<2x128xf32>
    %64 = arith.mulf %59, %63 : vector<2x128xf32>
    %cst_56 = arith.constant 3.753730e-01 : f32
    %65 = vector.broadcast %cst_56 : f32 to vector<2x128xf32>
    %66 = arith.addf %65, %64 : vector<2x128xf32>
    %c0_57 = arith.constant 0 : index
    %c0_58 = arith.constant 0 : index
    %67 = vector.load %arg5[%c0_57, %c0_58] : memref<2x128xf32, #tpu.memory_space<vmem>>, vector<2x128xf32>
    tpu.vector_store %arg5[%c0_57, %c0_58], %66 {strides = array<i32>} : memref<2x128xf32, #tpu.memory_space<vmem>>, vector<2x128xf32>,
    return
  }
}

</mosaic_0001>

<bundles_post_ra>
// kernel: he_cnn_forward.1
= control target key start
LH: loop header
LB: loop body
LE: loop exit
PB: predicated region body
PF: predicated region fallthrough
CT: control target
= control target key end

     0   :  { %10 = vsyncpa [#allocation5], 0  ;;  %s1688_s0 = inlined_call_operand.vmem [shape: f32[40,64], index: 0, kind: input, shape index: {}]   ;;  %s1689_s1 = inlined_call_operand.vmem [shape: f32[3,64,128], index: 1, kind: input, shape index: {}]   ;;  %s1690_s2 = inlined_call_operand.vmem [shape: f32[1,128], index: 2, kind: input, shape index: {}]   ;;  %s1691_s3 = inlined_call_operand.hbm [shape: f32[1024,128], index: 3, kind: input, shape index: {}]   ;;  %s1692_s4 = inlined_call_operand.vmem [shape: f32[1,128], index: 4, kind: input, shape index: {}]   ;;  %s1693_s5 = inlined_call_operand.hbm [shape: f32[2,128], index: 5, kind: output, shape index: {}]  }
   0x1   :  { %11 = vsyncpa [#allocation6], 0  ;;  %s1478_s18 = smov [#allocation4]   ;;  %s1430_s22 = scalar_lea.hbm %s1691_s3, 16384 }
   0x2   :  { %s23_s19 = sshll.u32 %s1478_s18, 4  ;;  %p1431_p0 = scmp.ne.s32.totalorder %s1691_s3, %s1430_s22  ;;  %s24_s19 = int_to_ptr.vmem [resolvable:$true] %s23_s19 }
   0x3   :  { %p1434_p1 = scmp.lt.u32.totalorder %s1430_s22, %s1691_s3 }
   0x5   :  { %p1436_p2 = pnand %p1434_p1, %p1431_p0 }
   0x7   :  { %1439 = shalt.err (!%p1436_p2)
}
   0x8   :  { %s1440_s27 = scalar_lea.vmem %s24_s19, 16384  ;;  %p1445_p4 = scmp.lt.s32.totalorder %s24_s19, %s24_s19 }
   0x9   :  { %p1441_p3 = scmp.ne.s32.totalorder %s24_s19, %s1440_s27  ;;  %p1446_p5 = scmp.lt.s32.totalorder %s1440_s27, %s1440_s27 }
   0xb   :  { %p1447_p6 = por %p1446_p5, %p1445_p4 }
   0xd   :  { %p1448_p7 = pnand %p1447_p6, %p1441_p3 }
   0xf   :  { %1451 = shalt.err (!%p1448_p7)
}
  0x10   :  { %s1479_s28 = smov 128   ;;  %s1480_s29 = smov 8  }
  0x11   :  { %29 = dma.hbm_to_vmem [thread:$0]  %s1691_s3, 16384, %s24_s19, [#allocation5], %s1479_s28, %s1479_s28, %s1480_s29  }
  0x12   :  { %1474 = dma.done.wait [#allocation5], 16384  }
  0x13   :  { %1475 = vsyncadd [#allocation5], 4294950912  ;;  %v957_v0 = vld [vmem:[%s1689_s1 + $0x40] sm:$0xff]  ;;  %v958_v1 = vld [vmem:[%s1689_s1 + $0x48] sm:$0xff]  ;;  %vm60_vm0 = vcmask 523264   ;;  %s1482_s27 = smov [#allocation7]  }
  0x14   :  { %v959_v2 = vld [vmem:[%s1689_s1 + $0x50] sm:$0xff]  ;;  %v1239_v3 = vpack.c.bf16 %v958_v1, %v957_v0  ;;  %v960_v4 = vld [vmem:[%s1689_s1 + $0x58] sm:$0xff]  ;;  %v961_v6 = vld [vmem:[%s1689_s1 + $0x60] sm:$0xff]  ;;  %s948_s28 = sshll.u32 %s1482_s27, 4  ;;  %s949_s28 = int_to_ptr.vmem [resolvable:$true] %s948_s28 }
  0x15   :  { %v1243_v5 = vpack.c.bf16 %v960_v4, %v959_v2  ;;  %v962_v7 = vld [vmem:[%s1689_s1 + $0x68] sm:$0xff]  ;;  %v963_v10 = vld [vmem:[%s1689_s1 + $0x70] sm:$0xff]  ;;  %v964_v11 = vld [vmem:[%s1689_s1 + $0x78] sm:$0xff]  ;;  %p1457_p9 = scmp.lt.s32.totalorder %s949_s28, %s949_s28 }
  0x16   :  { %v47_v8 = vld [vmem:[%s1688_s0 + $0x1] sm:$0xff]  ;;  %1240 = vmatprep.subr.bf16.mxu0 %v1239_v3  ;;  %v1247_v9 = vpack.c.bf16 %v962_v7, %v961_v6  ;;  %v1251_v12 = vpack.c.bf16 %v964_v11, %v963_v10  ;;  %v41_v16 = vld [vmem:[%s1689_s1 + $0x10] sm:$0xff]  ;;  %v42_v17 = vld [vmem:[%s1689_s1 + $0x18] sm:$0xff] }
  0x17   :  { %1189 = vmatprep.mubr.msk.f32.mxu0 %vm60_vm0, %v47_v8  ;;  %1242 = vmatpush3.bf16.msra.mxu0 %v1239_v3  ;;  %v39_v13 = vld [vmem:[%s1689_s1] sm:$0xff]  ;;  %v40_v14 = vld [vmem:[%s1689_s1 + $0x8] sm:$0xff]  ;;  %v1259_v19 = vpack.c.bf16 %v42_v17, %v41_v16  ;;  %v49_v20 = vld [vmem:[%s1688_s0 + $0x11] sm:$0xff] }
  0x18   :  { %1244 = vmatprep.subr.bf16.mxu0 %v1243_v5  ;;  %v1255_v15 = vpack.c.bf16 %v40_v14, %v39_v13  ;;  %v48_v18 = vld [vmem:[%s1688_s0 + $0x9] sm:$0xff]  ;;  %v43_v21 = vld [vmem:[%s1689_s1 + $0x20] sm:$0xff]  ;;  %v46_v27 = vld [vmem:[%s1689_s1 + $0x38] sm:$0xff] }
  0x19   :  { %v44_v22 = vld [vmem:[%s1689_s1 + $0x28] sm:$0xff]  ;;  %v50_v23 = vld [vmem:[%s1688_s0 + $0x19] sm:$0xff]  ;;  %v45_v26 = vld [vmem:[%s1689_s1 + $0x30] sm:$0xff] }
  0x1a   :  { %v1263_v24 = vpack.c.bf16 %v44_v22, %v43_v21  ;;  %v35_v25 = vld [vmem:[%s1688_s0] sm:$0xff]  ;;  %v1267_v28 = vpack.c.bf16 %v46_v27, %v45_v26  ;;  %v974_v30 = vld [vmem:[%s1689_s1 + $0x88] sm:$0xff]  ;;  %v975_v32 = vld [vmem:[%s1689_s1 + $0x90] sm:$0xff] }
  0x1b   :  { %1246 = vmatpush3.bf16.msra.mxu0 %v1243_v5  ;;  %v973_v29 = vld [vmem:[%s1689_s1 + $0x80] sm:$0xff]  ;;  %v976_v33 = vld [vmem:[%s1689_s1 + $0x98] sm:$0xff]  ;;  %v36_v34 = vld [vmem:[%s1688_s0 + $0x8] sm:$0xff] }
  0x1c   :  { %1248 = vmatprep.subr.bf16.mxu0 %v1247_v9  ;;  %v1271_v31 = vpack.c.bf16 %v974_v30, %v973_v29  ;;  %v1275_v35 = vpack.c.bf16 %v976_v33, %v975_v32  ;;  %v37_v36 = vld [vmem:[%s1688_s0 + $0x10] sm:$0xff]  ;;  %v977_v37 = vld [vmem:[%s1689_s1 + $0xa0] sm:$0xff]  ;;  %v978_v38 = vld [vmem:[%s1689_s1 + $0xa8] sm:$0xff] }
  0x1d   :  { %v38_v39 = vld [vmem:[%s1688_s0 + $0x18] sm:$0xff]  ;;  %v1279_v40 = vpack.c.bf16 %v978_v38, %v977_v37  ;;  %v255_v41 = vld [vmem:[%s1688_s0 + $0x2] sm:$0xff]  ;;  %v979_v42 = vld [vmem:[%s1689_s1 + $0xb0] sm:$0xff] }
  0x1e   :  { %v980_v43 = vld [vmem:[%s1689_s1 + $0xb8] sm:$0xff]  ;;  %v256_v45 = vld [vmem:[%s1688_s0 + $0xa] sm:$0xff]  ;;  %v495_v57 = vld [vmem:[#allocation4 + $0x90] sm:$0xff] }
  0x1f   :  { %1250 = vmatpush3.bf16.msra.mxu0 %v1247_v9  ;;  %v1283_v44 = vpack.c.bf16 %v980_v43, %v979_v42  ;;  %v257_v46 = vld [vmem:[%s1688_s0 + $0x12] sm:$0xff]  ;;  %v258_v47 = vld [vmem:[%s1688_s0 + $0x1a] sm:$0xff]  ;;  %v496_v58 = vld [vmem:[#allocation4 + $0x98] sm:$0xff] }
  0x20   :  { %1252 = vmatprep.subr.bf16.mxu0 %v1251_v12  ;;  %v493_v48 = vld [vmem:[#allocation4 + $0x80] sm:$0xff]  ;;  %v494_v49 = vld [vmem:[#allocation4 + $0x88] sm:$0xff]  ;;  %v1291_v60 = vpack.c.bf16 %v496_v58, %v495_v57  ;;  %v479_v62 = vld [vmem:[#allocation4 + $0x10] sm:$0xff] }
  0x21   :  { %v1287_v50 = vpack.c.bf16 %v494_v49, %v493_v48  ;;  %v477_v51 = vld [vmem:[#allocation4] sm:$0xff]  ;;  %v478_v52 = vld [vmem:[#allocation4 + $0x8] sm:$0xff]  ;;  %v480_v63 = vld [vmem:[#allocation4 + $0x18] sm:$0xff] }
  0x22   :  { %v1289_v53 = vpack.c.bf16 %v478_v52, %v477_v51  ;;  %v557_v54 = vld [vmem:[#allocation4 + $0x280] sm:$0xff]  ;;  %v558_v55 = vld [vmem:[#allocation4 + $0x288] sm:$0xff]  ;;  %v1293_v1 = vpack.c.bf16 %v480_v63, %v479_v62  ;;  %v559_v2 = vld [vmem:[#allocation4 + $0x290] sm:$0xff] }
  0x23   :  { %1254 = vmatpush3.bf16.msra.mxu0 %v1251_v12  ;;  %1288 = vmatprep.subr.bf16.mxu1 %v1287_v50  ;;  %v1351_v56 = vpack.c.bf16 %v558_v55, %v557_v54  ;;  %v541_v59 = vld [vmem:[#allocation4 + $0x200] sm:$0xff]  ;;  %v542_v61 = vld [vmem:[#allocation4 + $0x208] sm:$0xff]  ;;  %v560_v3 = vld [vmem:[#allocation4 + $0x298] sm:$0xff] }
  0x24   :  { %1256 = vmatprep.subr.bf16.mxu0 %v1255_v15  ;;  %1290 = vmatpush3.bf16.msra.mxu1 %v1289_v53  ;;  %v1353_v0 = vpack.c.bf16 %v542_v61, %v541_v59  ;;  %v1355_v4 = vpack.c.bf16 %v560_v3, %v559_v2  ;;  %v497_v5 = vld [vmem:[#allocation4 + $0xa0] sm:$0xff]  ;;  %v498_v6 = vld [vmem:[#allocation4 + $0xa8] sm:$0xff]  ;;  %v543_v7 = vld [vmem:[#allocation4 + $0x210] sm:$0xff] }
  0x25   :  { %1292 = vmatprep.subr.bf16.mxu1 %v1291_v60  ;;  %v1295_v8 = vpack.c.bf16 %v498_v6, %v497_v5  ;;  %v544_v9 = vld [vmem:[#allocation4 + $0x218] sm:$0xff]  ;;  %v481_v10 = vld [vmem:[#allocation4 + $0x20] sm:$0xff]  ;;  %v482_v11 = vld [vmem:[#allocation4 + $0x28] sm:$0xff] }
  0x26   :  { %1190 = vmatmul.mubr.msk.f32.vlgmr.msra.gmra.mrb[0].mxu0 %vm60_vm0, %v48_v18  ;;  %v1357_v12 = vpack.c.bf16 %v544_v9, %v543_v7  ;;  %v1297_v13 = vpack.c.bf16 %v482_v11, %v481_v10  ;;  %v561_v14 = vld [vmem:[#allocation4 + $0x2a0] sm:$0xff]  ;;  %v499_v17 = vld [vmem:[#allocation4 + $0xb0] sm:$0xff]  ;;  %v500_v18 = vld [vmem:[#allocation4 + $0xb8] sm:$0xff] }
  0x27   :  { %1258 = vmatpush3.bf16.msra.mxu0 %v1255_v15  ;;  %1192 = vmatprep.mubr.msk.f32.mxu0 %vm60_vm0, %v49_v20  ;;  %v562_v15 = vld [vmem:[#allocation4 + $0x2a8] sm:$0xff]  ;;  %v1299_v20 = vpack.c.bf16 %v500_v18, %v499_v17  ;;  %v483_v22 = vld [vmem:[#allocation4 + $0x30] sm:$0xff]  ;;  %v564_v27 = vld [vmem:[#allocation4 + $0x2b8] sm:$0xff] }
  0x28   :  { %1260 = vmatprep.subr.bf16.mxu0 %v1259_v19  ;;  %1294 = vmatpush3.bf16.msra.mxu1 %v1293_v1  ;;  %v1359_v16 = vpack.c.bf16 %v562_v15, %v561_v14  ;;  %v546_v21 = vld [vmem:[#allocation4 + $0x228] sm:$0xff]  ;;  %v563_v26 = vld [vmem:[#allocation4 + $0x2b0] sm:$0xff]  ;;  %v501_v29 = vld [vmem:[#allocation4 + $0xc0] sm:$0xff] }
  0x29   :  { %1296 = vmatprep.subr.bf16.mxu1 %v1295_v8  ;;  %v502_v30 = vld [vmem:[#allocation4 + $0xc8] sm:$0xff]  ;;  %v548_v33 = vld [vmem:[#allocation4 + $0x238] sm:$0xff]  ;;  %v565_v38 = vld [vmem:[#allocation4 + $0x2c0] sm:$0xff] }
  0x2a   :  { %1193 = vmatmul.mubr.msk.f32.gmra.mrb[2].mxu0 %vm60_vm0, %v50_v23  ;;  %v484_v23 = vld [vmem:[#allocation4 + $0x38] sm:$0xff]  ;;  %v1303_v32 = vpack.c.bf16 %v502_v30, %v501_v29  ;;  %v549_v43 = vld [vmem:[#allocation4 + $0x240] sm:$0xff]  ;;  %v567_v49 = vld [vmem:[#allocation4 + $0x2d0] sm:$0xff] }
  0x2b   :  { %1262 = vmatpush3.bf16.msra.mxu0 %v1259_v19  ;;  %1211 = vmatprep.mubr.msk.f32.mxu0 %vm60_vm0, %v35_v25  ;;  %v545_v19 = vld [vmem:[#allocation4 + $0x220] sm:$0xff]  ;;  %v1301_v25 = vpack.c.bf16 %v484_v23, %v483_v22  ;;  %v504_v42 = vld [vmem:[#allocation4 + $0xd8] sm:$0xff]  ;;  %v506_v53 = vld [vmem:[#allocation4 + $0xe8] sm:$0xff] }
  0x2c   :  { %1264 = vmatprep.subr.bf16.mxu0 %v1263_v24  ;;  %1298 = vmatpush3.bf16.msra.mxu1 %v1297_v13  ;;  %v488_v48 = vld [vmem:[#allocation4 + $0x58] sm:$0xff]  ;;  %v505_v52 = vld [vmem:[#allocation4 + $0xe0] sm:$0xff]  ;;  %v490_v60 = vld [vmem:[#allocation4 + $0x68] sm:$0xff] }
  0x2d   :  { %1300 = vmatprep.subr.bf16.mxu1 %v1299_v20  ;;  %v568_v51 = vld [vmem:[#allocation4 + $0x2d8] sm:$0xff]  ;;  %v1311_v55 = vpack.c.bf16 %v506_v53, %v505_v52  ;;  %v489_v58 = vld [vmem:[#allocation4 + $0x60] sm:$0xff]  ;;  %v570_v62 = vld [vmem:[#allocation4 + $0x2e8] sm:$0xff] }
  0x2e   :  { %v1371_v54 = vpack.c.bf16 %v568_v51, %v567_v49  ;;  %v552_v57 = vld [vmem:[#allocation4 + $0x258] sm:$0xff]  ;;  %v569_v61 = vld [vmem:[#allocation4 + $0x2e0] sm:$0xff]  ;;  %v1313_v63 = vpack.c.bf16 %v490_v60, %v489_v58  ;;  %v507_v1 = vld [vmem:[#allocation4 + $0xf0] sm:$0xff] }
  0x2f   :  { %1266 = vmatpush3.bf16.msra.mxu0 %v1263_v24  ;;  %v1361_v24 = vpack.c.bf16 %v546_v21, %v545_v19  ;;  %v508_v2 = vld [vmem:[#allocation4 + $0xf8] sm:$0xff]  ;;  %v553_v3 = vld [vmem:[#allocation4 + $0x260] sm:$0xff]  ;;  %v554_v5 = vld [vmem:[#allocation4 + $0x268] sm:$0xff] }
  0x30   :  { %1268 = vmatprep.subr.bf16.mxu0 %v1267_v28  ;;  %1302 = vmatpush3.bf16.msra.mxu1 %v1301_v25  ;;  %v491_v6 = vld [vmem:[#allocation4 + $0x70] sm:$0xff]  ;;  %v492_v7 = vld [vmem:[#allocation4 + $0x78] sm:$0xff]  ;;  %v1377_v10 = vpack.c.bf16 %v554_v5, %v553_v3  ;;  %v525_v13 = vld [vmem:[#allocation4 + $0x180] sm:$0xff] }
  0x31   :  { %1304 = vmatprep.subr.bf16.mxu1 %v1303_v32  ;;  %v571_v8 = vld [vmem:[#allocation4 + $0x2f0] sm:$0xff]  ;;  %v572_v9 = vld [vmem:[#allocation4 + $0x2f8] sm:$0xff]  ;;  %v1317_v11 = vpack.c.bf16 %v492_v7, %v491_v6  ;;  %v526_v14 = vld [vmem:[#allocation4 + $0x188] sm:$0xff] }
  0x32   :  { %v555_v15 = vld [vmem:[#allocation4 + $0x270] sm:$0xff]  ;;  %v556_v17 = vld [vmem:[#allocation4 + $0x278] sm:$0xff]  ;;  %v510_v60 = vld [vmem:[#allocation4 + $0x108] sm:$0xff] }
  0x33   :  { %1270 = vmatpush3.bf16.msra.mxu0 %v1267_v28  ;;  %v1363_v28 = vpack.c.bf16 %v564_v27, %v563_v26  ;;  %v1381_v18 = vpack.c.bf16 %v556_v17, %v555_v15  ;;  %v985_v19 = vld [vmem:[%s1690_s2] ss:$0 sm:$0xff]  ;;  %v398_v26 = vlaneseq  ;;  %v513_v15 = vld [vmem:[#allocation4 + $0x120] sm:$0xff] }
  0x34   :  { %1272 = vmatprep.subr.bf16.mxu0 %v1271_v31  ;;  %v511_v7 = vld [vmem:[#allocation4 + $0x110] sm:$0xff] }
  0x35   :  { %v399_v32 = vshrl.u32 %v398_v26, 7  ;;  %v531_v17 = vld [vmem:[#allocation4 + $0x1b0] sm:$0xff] }
  0x36   :  { %1212 = vmatmul.mubr.msk.f32.vlgmr.msra.gmra.mrb[0].mxu0 %vm60_vm0, %v36_v34  ;;  %v485_v34 = vld [vmem:[#allocation4 + $0x40] sm:$0xff] }
  0x37   :  { %1274 = vmatpush3.bf16.msra.mxu0 %v1271_v31  ;;  %1214 = vmatprep.mubr.msk.f32.mxu0 %vm60_vm0, %v37_v36  ;;  %v547_v31 = vld [vmem:[#allocation4 + $0x230] sm:$0xff] }
  0x38   :  { %1276 = vmatprep.subr.bf16.mxu0 %v1275_v35  ;;  %v1365_v36 = vpack.c.bf16 %v548_v33, %v547_v31 }
  0x3a   :  { %1215 = vmatmul.mubr.msk.f32.gmra.mrb[2].mxu0 %vm60_vm0, %v38_v39  ;;  %v566_v39 = vld [vmem:[#allocation4 + $0x2c8] sm:$0xff] }
  0x3b   :  { %1278 = vmatpush3.bf16.msra.mxu0 %v1275_v35  ;;  %1233 = vmatprep.mubr.msk.f32.mxu0 %vm60_vm0, %v255_v41  ;;  %v486_v35 = vld [vmem:[#allocation4 + $0x48] sm:$0xff]  ;;  %v1367_v41 = vpack.c.bf16 %v566_v39, %v565_v38 }
  0x3c   :  { %1280 = vmatprep.subr.bf16.mxu0 %v1279_v40  ;;  %v1305_v37 = vpack.c.bf16 %v486_v35, %v485_v34 }
  0x3e   :  { %1306 = vmatpush3.bf16.msra.mxu1 %v1305_v37 }
  0x3f   :  { %1282 = vmatpush3.bf16.msra.mxu0 %v1279_v40  ;;  %v503_v40 = vld [vmem:[#allocation4 + $0xd0] sm:$0xff] }
  0x40   :  { %1284 = vmatprep.subr.bf16.mxu0 %v1283_v44 }
  0x43   :  { %1286 = vmatpush3.bf16.msra.mxu0 %v1283_v44  ;;  %v550_v44 = vld [vmem:[#allocation4 + $0x248] sm:$0xff] }
  0x44   :  { %1352 = vmatprep.subr.bf16.mxu0 %v1351_v56  ;;  %v551_v56 = vld [vmem:[#allocation4 + $0x250] sm:$0xff] }
  0x45   :  { %v1373_v59 = vpack.c.bf16 %v552_v57, %v551_v56 }
  0x46   :  { %1234 = vmatmul.mubr.msk.f32.vlgmr.msra.gmra.mrb[0].mxu0 %vm60_vm0, %v256_v45  ;;  %v1307_v45 = vpack.c.bf16 %v504_v42, %v503_v40 }
  0x47   :  { %1236 = vmatprep.mubr.msk.f32.mxu0 %vm60_vm0, %v257_v46  ;;  %1354 = vmatpush3.bf16.msra.mxu0 %v1353_v0  ;;  %v1369_v46 = vpack.c.bf16 %v550_v44, %v549_v43  ;;  %v1375_v0 = vpack.c.bf16 %v570_v62, %v569_v61 }
  0x48   :  { %1356 = vmatprep.subr.bf16.mxu0 %v1355_v4  ;;  %1308 = vmatprep.subr.bf16.mxu1 %v1307_v45  ;;  %v1315_v4 = vpack.c.bf16 %v508_v2, %v507_v1 }
  0x4a   :  { %1237 = vmatmul.mubr.msk.f32.gmra.mrb[2].mxu0 %vm60_vm0, %v258_v47  ;;  %v487_v47 = vld [vmem:[#allocation4 + $0x50] sm:$0xff] }
  0x4b   :  { %1358 = vmatpush3.bf16.msra.mxu0 %v1357_v12  ;;  %v1309_v50 = vpack.c.bf16 %v488_v48, %v487_v47  ;;  %v1379_v12 = vpack.c.bf16 %v572_v9, %v571_v8  ;;  %v512_v8 = vld [vmem:[#allocation4 + $0x118] sm:$0xff] }
  0x4c   :  { %1360 = vmatprep.subr.bf16.mxu0 %v1359_v16  ;;  %v1319_v16 = vpack.c.bf16 %v526_v14, %v525_v13  ;;  %v1325_v13 = vpack.c.bf16 %v512_v8, %v511_v7 }
  0x4d   :  { %1310 = vmatpush3.bf16.msra.mxu1 %v1309_v50 }
  0x4e   :  { %1312 = vmatprep.subr.bf16.mxu1 %v1311_v55 }
  0x4f   :  { %1362 = vmatpush3.bf16.msra.mxu0 %v1361_v24  ;;  %v1481_v24 = vmov 1983009808  }
  0x50   :  { %1364 = vmatprep.subr.bf16.mxu0 %v1363_v28  ;;  %v396_v25 = vunpack.c.l.s4 %v1481_v24  ;;  %v534_v24 = vld [vmem:[#allocation4 + $0x1c8] sm:$0xff] }
  0x51   :  { %1314 = vmatpush3.bf16.msra.mxu1 %v1313_v63  ;;  %v527_v63 = vld [vmem:[#allocation4 + $0x190] sm:$0xff] }
  0x52   :  { %1316 = vmatprep.subr.bf16.mxu1 %v1315_v4  ;;  %v397_v31 = vunpack.c.0.s8 %v396_v25 }
  0x53   :  { %1366 = vmatpush3.bf16.msra.mxu0 %v1365_v36 }
  0x54   :  { %1368 = vmatprep.subr.bf16.mxu0 %v1367_v41  ;;  %v1648_v33 = vsub.s32 %v397_v31, %v399_v32 }
  0x55   :  { %1318 = vmatpush3.bf16.msra.mxu1 %v1317_v11  ;;  %v529_v11 = vld [vmem:[#allocation4 + $0x1a0] sm:$0xff] }
  0x56   :  { %1320 = vmatprep.subr.bf16.mxu1 %v1319_v16  ;;  %v514_v16 = vld [vmem:[#allocation4 + $0x128] sm:$0xff] }
  0x57   :  { %1370 = vmatpush3.bf16.msra.mxu0 %v1369_v46 }
  0x58   :  { %1372 = vmatprep.subr.bf16.mxu0 %v1371_v54 }
  0x5b   :  { %1374 = vmatpush3.bf16.msra.mxu0 %v1373_v59  ;;  %v509_v59 = vld [vmem:[#allocation4 + $0x100] sm:$0xff] }
  0x5c   :  { %1376 = vmatprep.subr.bf16.mxu0 %v1375_v0  ;;  %v528_v0 = vld [vmem:[#allocation4 + $0x198] sm:$0xff]  ;;  %v1321_v3 = vpack.c.bf16 %v510_v60, %v509_v59  ;;  %v575_v60 = vld [vmem:[#allocation4 + $0x310] sm:$0xff] }
  0x5d   :  { %v1323_v6 = vpack.c.bf16 %v528_v0, %v527_v63  ;;  %v593_v63 = vld [vmem:[#allocation4 + $0x3a0] sm:$0xff]  ;;  %v594_v0 = vld [vmem:[#allocation4 + $0x3a8] sm:$0xff] }
  0x5f   :  { %1378 = vmatpush3.bf16.msra.mxu0 %v1377_v10 }
  0x60   :  { %1380 = vmatprep.subr.bf16.mxu0 %v1379_v12  ;;  %v530_v12 = vld [vmem:[#allocation4 + $0x1a8] sm:$0xff] }
  0x61   :  { %v1327_v14 = vpack.c.bf16 %v530_v12, %v529_v11  ;;  %v597_v11 = vld [vmem:[#allocation4 + $0x3c0] sm:$0xff]  ;;  %v598_v12 = vld [vmem:[#allocation4 + $0x3c8] sm:$0xff] }
  0x63   :  { %1382 = vmatpush3.bf16.msra.mxu0 %v1381_v18  ;;  %v532_v18 = vld [vmem:[#allocation4 + $0x1b8] sm:$0xff] }
 0x119   :  { %v1235_v20 = vpop.f32.mrb[0].mxu0 }
 0x11a   :  { %v377_v21 = vadd.f32 %v1235_v20, %v985_v19  ;;  %v346_v22 = vpop.f32.mrb[1].mxu0  ;;  %v1331_v20 = vpack.c.bf16 %v532_v18, %v531_v17  ;;  %v600_v17 = vld [vmem:[#allocation4 + $0x3d8] sm:$0xff] }
 0x11b   :  { %v376_v23 = vadd.f32 %v985_v19, %v346_v22  ;;  %v516_v22 = vld [vmem:[#allocation4 + $0x138] sm:$0xff] }
 0x11c   :  { %381 = vst [vmem:[#allocation2 + $0x8] sm:$0xff] %v377_v21  ;;  %v515_v21 = vld [vmem:[#allocation4 + $0x130] sm:$0xff] }
 0x11d   :  { %380 = vst [vmem:[#allocation2] sm:$0xff] %v376_v23  ;;  %v1238_v27 = vpop.f32.mrb[2].mxu0  ;;  %v533_v23 = vld [vmem:[#allocation4 + $0x1c0] sm:$0xff]  ;;  %v1333_v25 = vpack.c.bf16 %v516_v22, %v515_v21  ;;  %v584_v21 = vld [vmem:[#allocation4 + $0x358] sm:$0xff] }
 0x11e   :  { %v379_v28 = vadd.f32 %v1238_v27, %v985_v19  ;;  %v356_v29 = vpop.f32.mrb[3].mxu0  ;;  %v1335_v26 = vpack.c.bf16 %v534_v24, %v533_v23  ;;  %v517_v27 = vld [vmem:[#allocation4 + $0x140] sm:$0xff]  ;;  %v602_v23 = vld [vmem:[#allocation4 + $0x3e8] sm:$0xff] }
 0x11f   :  { %v378_v30 = vadd.f32 %v985_v19, %v356_v29  ;;  %v1329_v19 = vpack.c.bf16 %v514_v16, %v513_v15  ;;  %v535_v29 = vld [vmem:[#allocation4 + $0x1d0] sm:$0xff]  ;;  %v582_v15 = vld [vmem:[#allocation4 + $0x348] sm:$0xff]  ;;  %v601_v22 = vld [vmem:[#allocation4 + $0x3e0] sm:$0xff] }
 0x120   :  { %383 = vst [vmem:[#allocation2 + $0x18] sm:$0xff] %v379_v28  ;;  %v518_v28 = vld [vmem:[#allocation4 + $0x148] sm:$0xff]  ;;  %v599_v16 = vld [vmem:[#allocation4 + $0x3d0] sm:$0xff] }
 0x121   :  { %382 = vst [vmem:[#allocation2 + $0x10] sm:$0xff] %v378_v30  ;;  %v536_v30 = vld [vmem:[#allocation4 + $0x1d8] sm:$0xff]  ;;  %v1337_v31 = vpack.c.bf16 %v518_v28, %v517_v27  ;;  %v586_v27 = vld [vmem:[#allocation4 + $0x368] sm:$0xff]  ;;  %v603_v28 = vld [vmem:[#allocation4 + $0x3f0] sm:$0xff] }
 0x122   :  { %v1339_v32 = vpack.c.bf16 %v536_v30, %v535_v29  ;;  %v604_v29 = vld [vmem:[#allocation4 + $0x3f8] sm:$0xff] }
 0x124   :  { %v384_v34 = vld [vmem:[#allocation2] ss:$2 sm:$0xff]  ;;  %v388_v35 = vld [vmem:[#allocation2 + $0x1] ss:$2 sm:$0xff] }
 0x125   :  { %v391_v36 = vadd.f32 %v388_v35, %v384_v34  ;;  %v519_v34 = vld [vmem:[#allocation4 + $0x150] sm:$0xff]  ;;  %v520_v35 = vld [vmem:[#allocation4 + $0x158] sm:$0xff] }
 0x127   :  { %v413_v37 = vcombine.high %v391_v36, %v391_v36  ;;  %393 = vst [vmem:[#allocation3] sm:$0x1] %v391_v36  ;;  %v401_v38 = vrot.slane %v391_v36, %v1648_v33  ;;  %v537_v36 = vld [vmem:[#allocation4 + $0x1e0] sm:$0xff] }
 0x128   :  { %v386_v39 = vld [vmem:[#allocation2 + $0x10] ss:$2 sm:$0xff]  ;;  %v390_v40 = vld [vmem:[#allocation2 + $0x11] ss:$2 sm:$0xff] }
 0x129   :  { %988 = vst.sshfl [vmem:[#allocation3 + $0x8] sm:$0x1 pattern:$0x76325410] %v413_v37  ;;  %v392_v41 = vadd.f32 %v390_v40, %v386_v39  ;;  %v986_v42 = vrot.slane %v401_v38, 9  ;;  %v406_v43 = vcombine.high %v401_v38, %v401_v38  ;;  %v420_v44 = vrot.slane %v413_v37, %v1648_v33  ;;  %v538_v37 = vld [vmem:[#allocation4 + $0x1e8] sm:$0xff] }
 0x12a   :  { %v1341_v38 = vpack.c.bf16 %v520_v35, %v519_v34  ;;  %v1343_v39 = vpack.c.bf16 %v538_v37, %v537_v36  ;;  %v521_v40 = vld [vmem:[#allocation4 + $0x160] sm:$0xff]  ;;  %v588_v34 = vld [vmem:[#allocation4 + $0x378] sm:$0xff] }
 0x12b   :  { %v454_v45 = vcombine.high %v392_v41, %v392_v41  ;;  %434 = vst [vmem:[#allocation3 + $0x1] sm:$0x1] %v392_v41  ;;  %405 = vst [vmem:[#allocation3 + $0x2] sm:$0x1] %v986_v42  ;;  %v987_v46 = vrot.slane %v406_v43, 9  ;;  %v442_v47 = vrot.slane %v392_v41, %v1648_v33  ;;  %v989_v48 = vrot.slane %v420_v44, 9 }
 0x12c   :  { %408 = vst [vmem:[#allocation3 + $0x4] sm:$0x1] %v406_v43  ;;  %v427_v49 = vcombine.high %v420_v44, %v420_v44  ;;  %v522_v41 = vld [vmem:[#allocation4 + $0x168] sm:$0xff]  ;;  %v539_v42 = vld [vmem:[#allocation4 + $0x1f0] sm:$0xff]  ;;  %v540_v43 = vld [vmem:[#allocation4 + $0x1f8] sm:$0xff] }
 0x12d   :  { %993 = vst.sshfl [vmem:[#allocation3 + $0x9] sm:$0x1 pattern:$0x76325410] %v454_v45  ;;  %412 = vst [vmem:[#allocation3 + $0x6] sm:$0x1] %v987_v46  ;;  %v447_v51 = vcombine.high %v442_v47, %v442_v47  ;;  %v461_v52 = vrot.slane %v454_v45, %v1648_v33  ;;  %v1345_v44 = vpack.c.bf16 %v522_v41, %v521_v40 }
 0x12e   :  { %v991_v50 = vrot.slane %v442_v47, 9  ;;  %426 = vst [vmem:[#allocation3 + $0xa] sm:$0x1] %v989_v48  ;;  %429 = vst [vmem:[#allocation3 + $0xc] sm:$0x1] %v427_v49  ;;  %v990_v53 = vrot.slane %v427_v49, 9  ;;  %v1347_v45 = vpack.c.bf16 %v540_v43, %v539_v42 }
 0x12f   :  { %449 = vst [vmem:[#allocation3 + $0x5] sm:$0x1] %v447_v51  ;;  %v992_v54 = vrot.slane %v447_v51, 9  ;;  %v994_v55 = vrot.slane %v461_v52, 9  ;;  %v468_v56 = vcombine.high %v461_v52, %v461_v52  ;;  %v523_v46 = vld [vmem:[#allocation4 + $0x170] sm:$0xff]  ;;  %v524_v47 = vld [vmem:[#allocation4 + $0x178] sm:$0xff] }
 0x130   :  { %446 = vst [vmem:[#allocation3 + $0x3] sm:$0x1] %v991_v50  ;;  %433 = vst [vmem:[#allocation3 + $0xe] sm:$0x1] %v990_v53  ;;  %v589_v48 = vld [vmem:[#allocation4 + $0x380] sm:$0xff]  ;;  %v590_v49 = vld [vmem:[#allocation4 + $0x388] sm:$0xff]  ;;  %v1349_v51 = vpack.c.bf16 %v524_v47, %v523_v46 }
 0x131   :  { %453 = vst [vmem:[#allocation3 + $0x7] sm:$0x1] %v992_v54  ;;  %467 = vst [vmem:[#allocation3 + $0xb] sm:$0x1] %v994_v55  ;;  %v995_v57 = vrot.slane %v468_v56, 9  ;;  %v1383_v52 = vpack.c.bf16 %v590_v49, %v589_v48  ;;  %v573_v53 = vld [vmem:[#allocation4 + $0x300] sm:$0xff] }
 0x132   :  { %470 = vst [vmem:[#allocation3 + $0xd] sm:$0x1] %v468_v56  ;;  %v574_v54 = vld [vmem:[#allocation4 + $0x308] sm:$0xff]  ;;  %v591_v56 = vld [vmem:[#allocation4 + $0x390] sm:$0xff] }
 0x133   :  { %474 = vst [vmem:[#allocation3 + $0xf] sm:$0x1] %v995_v57  ;;  %v592_v57 = vld [vmem:[#allocation4 + $0x398] sm:$0xff]  ;;  %v996_v42 = vld [vmem:[%s1692_s4] ss:$0 sm:$0xff]  ;;  %s1452_s4 = scalar_lea.vmem %s949_s28, 32 }
 0x134   :  { %v1387_v59 = vpack.c.bf16 %v592_v57, %v591_v56  ;;  %p1453_p8 = scmp.ne.s32.totalorder %s949_s28, %s1452_s4  ;;  %p1458_p10 = scmp.lt.s32.totalorder %s1452_s4, %s1452_s4 }
 0x136   :  { %p1459_p11 = por %p1458_p10, %p1457_p9 }
 0x138   :  { %v475_v58 = vld [vmem:[#allocation3] sm:$0xff]  ;;  %p1460_p12 = pnand %p1459_p11, %p1453_p8 }
 0x139   :  { %v614_v61 = vcombine.high %v475_v58, %v475_v58  ;;  %v621_v62 = vrot.slane %v475_v58, %v1648_v33  ;;  %v1385_v58 = vpack.c.bf16 %v574_v54, %v573_v53 }
 0x13a   :  { %v1655_v1 = vld [vmem:[#allocation3 + $0x8] sm:$0xff] }
 0x13b   :  { %v629_v2 = vcombine.high %v621_v62, %v621_v62  ;;  %v1658_v4 = vrot.slane %v614_v61, %v1648_v33  ;;  %v638_v5 = vrot.slane %v1655_v1, %v1648_v33  ;;  %v631_v50 = vcombine.high %v1655_v1, %v1655_v1  ;;  %v576_v61 = vld [vmem:[#allocation4 + $0x318] sm:$0xff] }
 0x13c   :  { %v1389_v1 = vpack.c.bf16 %v576_v61, %v575_v60 }
 0x13d   :  { %720 = vmatprep.mubr.f32.mxu1 %v629_v2  ;;  %v630_v9 = vcombine.high %v1658_v4, %v1658_v4  ;;  %v646_v10 = vcombine.high %v638_v5, %v638_v5  ;;  %v1667_v55 = vrot.slane %v631_v50, %v1648_v33  ;;  %v1391_v33 = vpack.c.bf16 %v594_v0, %v593_v63  ;;  %v577_v2 = vld [vmem:[#allocation4 + $0x320] sm:$0xff] }
 0x13e   :  { %721 = vmatmul.mubr.f32.vlgmr.msra.gmra.mrb[0].mxu1 %v621_v62 }
 0x13f   :  { %1322 = vmatpush3.bf16.msra.mxu1 %v1321_v3  ;;  %790 = vmatprep.mubr.f32.mxu1 %v630_v9  ;;  %v647_v62 = vcombine.high %v1667_v55, %v1667_v55  ;;  %v578_v3 = vld [vmem:[#allocation4 + $0x328] sm:$0xff]  ;;  %v579_v9 = vld [vmem:[#allocation4 + $0x330] sm:$0xff] }
 0x140   :  { %860 = vmatprep.mubr.f32.mxu0 %v646_v10  ;;  %1324 = vmatprep.subr.bf16.mxu1 %v1323_v6  ;;  %v596_v6 = vld [vmem:[#allocation4 + $0x3b8] sm:$0xff]  ;;  %v1393_v7 = vpack.c.bf16 %v578_v3, %v577_v2 }
 0x141   :  { %861 = vmatmul.mubr.f32.vlgmr.msra.gmra.mrb[4].mxu0 %v638_v5  ;;  %v595_v5 = vld [vmem:[#allocation4 + $0x3b0] sm:$0xff]  ;;  %v580_v10 = vld [vmem:[#allocation4 + $0x338] sm:$0xff] }
 0x142   :  { %v1395_v8 = vpack.c.bf16 %v596_v6, %v595_v5 }
 0x143   :  { %1326 = vmatpush3.bf16.msra.mxu1 %v1325_v13  ;;  %v1397_v13 = vpack.c.bf16 %v580_v10, %v579_v9 }
 0x144   :  { %1328 = vmatprep.subr.bf16.mxu1 %v1327_v14  ;;  %v581_v14 = vld [vmem:[#allocation4 + $0x340] sm:$0xff] }
 0x145   :  { %v1401_v18 = vpack.c.bf16 %v582_v15, %v581_v14 }
 0x147   :  { %1330 = vmatpush3.bf16.msra.mxu1 %v1329_v19  ;;  %v1403_v19 = vpack.c.bf16 %v600_v17, %v599_v16 }
 0x148   :  { %1332 = vmatprep.subr.bf16.mxu1 %v1331_v20  ;;  %v583_v20 = vld [vmem:[#allocation4 + $0x350] sm:$0xff] }
 0x149   :  { %v1405_v24 = vpack.c.bf16 %v584_v21, %v583_v20 }
 0x14b   :  { %1334 = vmatpush3.bf16.msra.mxu1 %v1333_v25  ;;  %v1407_v25 = vpack.c.bf16 %v602_v23, %v601_v22 }
 0x14c   :  { %1336 = vmatprep.subr.bf16.mxu1 %v1335_v26  ;;  %v585_v26 = vld [vmem:[#allocation4 + $0x360] sm:$0xff] }
 0x14d   :  { %v1409_v30 = vpack.c.bf16 %v586_v27, %v585_v26 }
 0x14f   :  { %1338 = vmatpush3.bf16.msra.mxu1 %v1337_v31  ;;  %v1411_v31 = vpack.c.bf16 %v604_v29, %v603_v28 }
 0x150   :  { %1340 = vmatprep.subr.bf16.mxu1 %v1339_v32  ;;  %v587_v32 = vld [vmem:[#allocation4 + $0x370] sm:$0xff] }
 0x151   :  { %v1413_v35 = vpack.c.bf16 %v588_v34, %v587_v32 }
 0x153   :  { %1342 = vmatpush3.bf16.msra.mxu1 %v1341_v38 }
 0x154   :  { %1344 = vmatprep.subr.bf16.mxu1 %v1343_v39 }
 0x157   :  { %1346 = vmatpush3.bf16.msra.mxu1 %v1345_v44 }
 0x158   :  { %1348 = vmatprep.subr.bf16.mxu1 %v1347_v45 }
 0x15b   :  { %1350 = vmatpush3.bf16.msra.mxu1 %v1349_v51 }
 0x15c   :  { %1384 = vmatprep.subr.bf16.mxu1 %v1383_v52 }
 0x15e   :  { %791 = vmatmul.mubr.f32.vlgmr.msra.gmra.mrb[2].mxu1 %v1658_v4  ;;  %v1399_v4 = vpack.c.bf16 %v598_v12, %v597_v11 }
 0x15f   :  { %1386 = vmatpush3.bf16.msra.mxu1 %v1385_v58  ;;  %930 = vmatprep.mubr.f32.mxu1 %v647_v62 }
 0x160   :  { %1388 = vmatprep.subr.bf16.mxu1 %v1387_v59 }
 0x163   :  { %1390 = vmatpush3.bf16.msra.mxu1 %v1389_v1 }
 0x164   :  { %1392 = vmatprep.subr.bf16.mxu1 %v1391_v33 }
 0x167   :  { %1394 = vmatpush3.bf16.msra.mxu1 %v1393_v7 }
 0x168   :  { %1396 = vmatprep.subr.bf16.mxu1 %v1395_v8 }
 0x16b   :  { %1398 = vmatpush3.bf16.msra.mxu1 %v1397_v13 }
 0x16c   :  { %1400 = vmatprep.subr.bf16.mxu1 %v1399_v4 }
 0x16f   :  { %1402 = vmatpush3.bf16.msra.mxu1 %v1401_v18 }
 0x170   :  { %1404 = vmatprep.subr.bf16.mxu1 %v1403_v19 }
 0x173   :  { %1406 = vmatpush3.bf16.msra.mxu1 %v1405_v24 }
 0x174   :  { %1408 = vmatprep.subr.bf16.mxu1 %v1407_v25 }
 0x177   :  { %1410 = vmatpush3.bf16.msra.mxu1 %v1409_v30 }
 0x178   :  { %1412 = vmatprep.subr.bf16.mxu1 %v1411_v31 }
 0x17b   :  { %1414 = vmatpush3.bf16.msra.mxu1 %v1413_v35 }
 0x17e   :  { %931 = vmatmul.mubr.f32.vlgmr.msra.gmra.mrb[4].mxu1 %v1667_v55 }
 0x211   :  { %v1065_v36 = vpop.f32.mrb[0].mxu1 }
 0x212   :  { %v1066_v37 = vpop.f32.mrb[1].mxu1 }
 0x213   :  { %v1067_v38 = vadd.f32 %v1066_v37, %v1065_v36 }
 0x214   :  { %v1135_v39 = vpop.f32.mrb[4].mxu0 }
 0x215   :  { %v1136_v40 = vpop.f32.mrb[5].mxu0  ;;  %v723_v45 = vadd.f32 %v1067_v38, %v996_v42 }
 0x216   :  { %v1137_v41 = vadd.f32 %v1136_v40, %v1135_v39 }
 0x231   :  { %v1100_v43 = vpop.f32.mrb[2].mxu1 }
 0x232   :  { %v1101_v44 = vpop.f32.mrb[3].mxu1 }
 0x233   :  { %v1102_v46 = vadd.f32 %v1101_v44, %v1100_v43 }
 0x235   :  { %v793_v47 = vadd.f32 %v1102_v46, %v723_v45 }
 0x237   :  { %v863_v48 = vadd.f32 %v1137_v41, %v793_v47 }
 0x251   :  { %v1170_v49 = vpop.f32.mrb[4].mxu1 }
 0x252   :  { %v1171_v50 = vpop.f32.mrb[5].mxu1 }
 0x253   :  { %v1172_v51 = vadd.f32 %v1171_v50, %v1170_v49 }
 0x255   :  { %v933_v52 = vadd.f32 %v1172_v51, %v863_v48 }
 0x257   :  { %v936_v53 = vmul.f32 %v933_v52, %v933_v52 }
 0x259   :  { %v937_v54 = vmul.f32 0.117071, %v936_v53 }
 0x25b   :  { %v938_v55 = vadd.f32 0.5, %v937_v54 }
 0x25d   :  { %v939_v56 = vmul.f32 %v938_v55, %v936_v53 }
 0x25f   :  { %v940_v57 = vadd.f32 0.375373, %v939_v56 }
 0x261   :  { %941 = vst [vmem:[#allocation7] sm:$0x3] %v940_v57 }
 0x262   :  { %1463 = shalt.err (!%p1460_p12)
}
 0x263   :  { %s1464_s6 = scalar_lea.hbm %s1693_s5, 32 }
 0x264   :  { %p1465_p13 = scmp.ne.s32.totalorder %s1693_s5, %s1464_s6  ;;  %p1468_p0 = scmp.lt.u32.totalorder %s1464_s6, %s1693_s5 }
 0x266   :  { %p1470_p1 = pnand %p1468_p0, %p1465_p13 }
 0x268   :  { %1473 = shalt.err (!%p1470_p1)
}
 0x269   :  { %951 = dma.vmem_to_hbm [thread:$0]  %s949_s28, 32, %s1693_s5, [#allocation6]  }
 0x26a   :  { %1476 = dma.done.wait [#allocation6], 32  }
 0x26b   :  { %1477 = vsyncadd [#allocation6], 4294967264 }
 0x26c   :  { %955 = vsyncpa [#allocation5], 1 }
 0x26d   :  { %956 = vsyncpa [#allocation6], 1 }

</bundles_post_ra>
